<compile_context>
chip_gen: v6e
topology: v6e:2x2x1
jax: 0.10.0
libtpu: 0.0.40
codegen_flags: <defaults>
</compile_context>

<pallas_src>
import functools
import math

import jax
import jax.numpy as jnp
from jax.experimental import pallas as pl
from jax.experimental.pallas import tpu as pltpu


# --------------------------------------------------------------------------- kernels


def _row_losses(x_ref, t_ref, *, batch, tb, inv_cols, log_eps):
    """Per-row loss for one (tb, C) tile; rows past the true batch are masked to 0."""
    x = x_ref[...].astype(jnp.float32)          # (tb, C)
    t = t_ref[...].astype(jnp.float32)          # (tb, 1)

    # log(sigmoid(x)) with one exp + one log (stable: exp argument is always <= 0).
    # log(1 - sigmoid(x)) = log(sigmoid(x)) - x  -> second log is never needed.
    # Clamping in log-space (max with log(eps)) == clamping the probability at eps.
    logp_raw = jnp.minimum(x, 0.0) - jnp.log(1.0 + jnp.exp(-jnp.abs(x)))
    logp = jnp.maximum(logp_raw, log_eps)                  # == log(clamp(p, eps))
    log_false = jnp.clip(logp_raw - x, log_eps, 0.0)       # == log(clamp(1 - p, eps))

    l0 = -t * jnp.max(logp, axis=1, keepdims=True)                                # (tb, 1)
    l1 = -(1.0 - t) * (jnp.sum(log_false, axis=1, keepdims=True) * inv_cols)      # (tb, 1)
    loss = l0 + l1

    # Mask rows of the ragged last tile (garbage / padded reads -> contribute 0).
    row0 = pl.program_id(0) * tb
    rows = row0 + jax.lax.broadcasted_iota(jnp.int32, (tb, 1), 0)
    return jnp.where(rows < batch, loss, 0.0)


def _mean_kernel(x_ref, t_ref, out_ref, *, batch, tb, inv_cols, log_eps):
    # out_ref: (8, 128) f32 accumulator block, resident across the whole grid.
    loss = _row_losses(x_ref, t_ref, batch=batch, tb=tb, inv_cols=inv_cols,
                       log_eps=log_eps)

    @pl.when(pl.program_id(0) == 0)
    def _():
        out_ref[...] = jnp.zeros_like(out_ref)

    # Broadcast the tile's loss-sum into the lane-dense block (every element holds
    # the running total); wrapper reads element [0, 0].
    out_ref[...] += jnp.sum(loss)


def _rowwise_kernel(x_ref, t_ref, out_ref, *, batch, tb, inv_cols, log_eps):
    # out_ref: (tb, 1) per-row losses (reduction='none' path).
    out_ref[...] = _row_losses(x_ref, t_ref, batch=batch, tb=tb, inv_cols=inv_cols,
                               log_eps=log_eps)


# --------------------------------------------------------------------------- wrapper


def _round_down8(v):
    return max(8, (v // 8) * 8)


def _choose_tb(batch, num_columns, itemsize):
    """Pick a batch tile: ~1 MiB input blocks, capped at 8192 rows / ~4 MiB / batch."""
    if batch <= 8:
        return batch                       # block dim == full array dim is always legal
    bytes_per_row = max(1, num_columns * itemsize)
    rows = (1 << 20) // bytes_per_row                       # ~1 MiB HBM->VMEM block
    rows = min(max(rows, 512), 8192)                        # amortize per-step overhead
    rows = min(rows, max(8, (4 << 20) // (num_columns * 4)))  # <=~4 MiB f32 in VMEM
    rows = min(rows, (batch // 8) * 8)                      # never tile past the batch
    return _round_down8(rows)


def multi_head_loss(inputs, targets, *, num_columns, reduction="mean", eps=1e-12,
                    tb=None):
    """Pallas TPU forward of MultiHeadLoss. inputs: (B, C); targets: (B,)."""
    B, C = inputs.shape
    assert C == num_columns, "num_columns must match inputs.shape[1]"

    if tb is None:
        tb = _choose_tb(B, C, inputs.dtype.itemsize)
    tb = min(tb, B) if B <= 8 else tb
    num_tiles = pl.cdiv(B, tb)

    targets_2d = targets.reshape(B, 1)     # contiguous reshape: no HBM copy

    static = dict(batch=B, tb=tb, inv_cols=1.0 / float(num_columns),
                  log_eps=float(math.log(eps)))

    in_specs = [
        pl.BlockSpec((tb, C), lambda i: (i, 0)),   # inputs tile
        pl.BlockSpec((tb, 1), lambda i: (i, 0)),   # targets tile
    ]

    cost = pl.CostEstimate(
        flops=10 * B * C,
        transcendentals=2 * B * C,                 # one exp + one log per element
        bytes_accessed=B * C * inputs.dtype.itemsize
        + B * targets.dtype.itemsize
        + (8 * 128 * 4 if reduction == "mean" else B * 4),
    )

    if reduction == "mean":
        out = pl.pallas_call(
            functools.partial(_mean_kernel, **static),
            out_shape=jax.ShapeDtypeStruct((8, 128), jnp.float32),
            grid_spec=pltpu.PrefetchScalarGridSpec(
                num_scalar_prefetch=0,
                grid=(num_tiles,),
                in_specs=in_specs,
                out_specs=pl.BlockSpec((8, 128), lambda i: (0, 0)),
            ),
            compiler_params=pltpu.CompilerParams(
                dimension_semantics=("arbitrary",)),   # accumulator -> reduction axis
            cost_estimate=cost,
        )(inputs, targets_2d)
        return out[0, 0] / B

    # reduction == 'none' : per-row losses.
    out = pl.pallas_call(
        functools.partial(_rowwise_kernel, **static),
        out_shape=jax.ShapeDtypeStruct((B, 1), jnp.float32),
        grid_spec=pltpu.PrefetchScalarGridSpec(
            num_scalar_prefetch=0,
            grid=(num_tiles,),
            in_specs=in_specs,
            out_specs=pl.BlockSpec((tb, 1), lambda i: (i, 0)),
        ),
        compiler_params=pltpu.CompilerParams(dimension_semantics=("parallel",)),
        cost_estimate=cost,
    )(inputs, targets_2d)
    return out[:, 0]


# --------------------------------------------------------------------------- reference


def _reference(inputs, targets, *, num_columns, reduction="mean", eps=1e-12):
    # Pure-JAX mirror of the PyTorch forward, for correctness checking.
    p = jax.nn.sigmoid(inputs.astype(jnp.float32))
    logp = jnp.log(jnp.maximum(p, eps))
    log_false = jnp.log(jnp.maximum(1.0 - p, eps))
    l0 = -targets * jnp.max(logp, axis=1)
    l1 = -(1.0 - targets) * jnp.sum(log_false, axis=1) / num_columns
    loss = l0 + l1
    return jnp.mean(loss) if reduction == "mean" else loss


# --------------------------------------------------------------------------- test


if __name__ == "__main__":
    # Small shapes; B is deliberately not a multiple of the tile used below so the
    # ragged-tile masking and multi-step mean accumulation are both exercised.
    B, C = 200, 32

    key = jax.random.PRNGKey(0)
    k1, k2 = jax.random.split(key)
    inputs = jax.random.normal(k1, (B, C), dtype=jnp.float32) * 2.0
    targets = jax.random.bernoulli(k2, 0.5, (B,)).astype(jnp.float32)

    # Override tb so this tiny test still runs a 4-step grid (production sizes use
    # the auto-chosen ~1 MiB tiles).
    out_mean = multi_head_loss(inputs, targets, num_columns=C, reduction="mean", tb=64)
    out_none = multi_head_loss(inputs, targets, num_columns=C, reduction="none", tb=64)
    out_mean, out_none = jax.block_until_ready((out_mean, out_none))

    ref_mean = _reference(inputs, targets, num_columns=C, reduction="mean")
    ref_none = _reference(inputs, targets, num_columns=C, reduction="none")

    assert jnp.allclose(out_mean, ref_mean, rtol=1e-5, atol=1e-5), (out_mean, ref_mean)
    assert jnp.allclose(out_none, ref_none, rtol=1e-5, atol=1e-5)

    print("KERNEL_OK")
</pallas_src>

<mosaic_0001>
module attributes {stable_mosaic.version = 11 : i64} {
  func.func @_mean_kernel(%arg0: i32, %arg1: memref<64x32xf32, #tpu.memory_space<vmem>>, %arg2: memref<64x1xf32, #tpu.memory_space<vmem>>, %arg3: memref<8x128xf32, #tpu.memory_space<vmem>>) attributes {dimension_semantics = [#tpu.dimension_semantics<arbitrary>], iteration_bounds = array<i64: 4>, scalar_prefetch = 0 : i64, scratch_operands = 0 : i64, tpu.core_type = #tpu.core_type<tc>, window_params = [{transform_indices = @transform_0, window_bounds = array<i64: 64, 32>}, {transform_indices = @transform_1, window_bounds = array<i64: 64, 1>}, {pipeline_mode = #tpu.pipeline_mode<synchronous>, transform_indices = @transform_2, window_bounds = array<i64: 8, 128>}]} {
    %c0 = arith.constant 0 : index
    %c0_0 = arith.constant 0 : index
    %0 = vector.load %arg1[%c0, %c0_0] : memref<64x32xf32, #tpu.memory_space<vmem>>, vector<64x32xf32>
    %c0_1 = arith.constant 0 : index
    %c0_2 = arith.constant 0 : index
    %1 = vector.load %arg2[%c0_1, %c0_2] : memref<64x1xf32, #tpu.memory_space<vmem>>, vector<64x1xf32>
    %cst = arith.constant 0.000000e+00 : f32
    %2 = vector.broadcast %cst : f32 to vector<64x32xf32>
    %3 = arith.minimumf %0, %2 : vector<64x32xf32>
    %4 = math.absf %0 : vector<64x32xf32>
    %cst_3 = arith.constant 0.000000e+00 : f32
    %5 = vector.broadcast %cst_3 : f32 to vector<64x32xf32>
    %6 = arith.subf %5, %4 : vector<64x32xf32>
    %7 = math.exp %6 : vector<64x32xf32>
    %cst_4 = arith.constant 1.000000e+00 : f32
    %8 = vector.broadcast %cst_4 : f32 to vector<64x32xf32>
    %9 = arith.addf %8, %7 : vector<64x32xf32>
    %10 = math.log %9 : vector<64x32xf32>
    %11 = arith.subf %3, %10 : vector<64x32xf32>
    %cst_5 = arith.constant -27.6310215 : f32
    %12 = vector.broadcast %cst_5 : f32 to vector<64x32xf32>
    %13 = arith.maximumf %11, %12 : vector<64x32xf32>
    %14 = arith.subf %11, %0 : vector<64x32xf32>
    %cst_6 = arith.constant -27.6310215 : f32
    %cst_7 = arith.constant 0.000000e+00 : f32
    %15 = vector.broadcast %cst_6 : f32 to vector<64x32xf32>
    %16 = arith.maximumf %15, %14 : vector<64x32xf32>
    %17 = vector.broadcast %cst_7 : f32 to vector<64x32xf32>
    %18 = arith.minimumf %17, %16 : vector<64x32xf32>
    %cst_8 = arith.constant 0.000000e+00 : f32
    %19 = vector.broadcast %cst_8 : f32 to vector<64x1xf32>
    %20 = arith.subf %19, %1 : vector<64x1xf32>
    %cst_9 = arith.constant dense<0xFF800000> : vector<64xf32>
    %21 = vector.multi_reduction <maximumf>, %13, %cst_9 [1] : vector<64x32xf32> to vector<64xf32>
    %22 = vector.shape_cast %21 : vector<64xf32> to vector<64x1xf32>
    %23 = arith.mulf %20, %22 : vector<64x1xf32>
    %cst_10 = arith.constant 1.000000e+00 : f32
    %24 = vector.broadcast %cst_10 : f32 to vector<64x1xf32>
    %25 = arith.subf %24, %1 : vector<64x1xf32>
    %cst_11 = arith.constant 0.000000e+00 : f32
    %26 = vector.broadcast %cst_11 : f32 to vector<64x1xf32>
    %27 = arith.subf %26, %25 : vector<64x1xf32>
    %cst_12 = arith.constant dense<0.000000e+00> : vector<64xf32>
    %28 = vector.multi_reduction <add>, %18, %cst_12 [1] : vector<64x32xf32> to vector<64xf32>
    %29 = vector.shape_cast %28 : vector<64xf32> to vector<64x1xf32>
    %cst_13 = arith.constant 3.125000e-02 : f32
    %30 = vector.broadcast %cst_13 : f32 to vector<64x1xf32>
    %31 = arith.mulf %29, %30 : vector<64x1xf32>
    %32 = arith.mulf %27, %31 : vector<64x1xf32>
    %33 = arith.addf %23, %32 : vector<64x1xf32>
    %c64_i32 = arith.constant 64 : i32
    %34 = arith.muli %arg0, %c64_i32 : i32
    %35 = tpu.iota {dimensions = array<i32: 0>} : vector<64x1xi32>
    %36 = vector.broadcast %34 : i32 to vector<64x1xi32>
    %37 = arith.addi %36, %35 : vector<64x1xi32>
    %c200_i32 = arith.constant 200 : i32
    %38 = vector.broadcast %c200_i32 : i32 to vector<64x1xi32>
    %39 = arith.cmpi slt, %37, %38 : vector<64x1xi32>
    %cst_14 = arith.constant 0.000000e+00 : f32
    %40 = vector.broadcast %cst_14 : f32 to vector<64x1xf32>
    %41 = arith.select %39, %33, %40 : vector<64x1xi1>, vector<64x1xf32>
    %c0_i32 = arith.constant 0 : i32
    %42 = arith.cmpi eq, %arg0, %c0_i32 : i32
    %43 = arith.extui %42 : i1 to i32
    %c0_i32_15 = arith.constant 0 : i32
    %44 = arith.cmpi ne, %43, %c0_i32_15 : i32
    scf.if %44 {
      %cst_21 = arith.constant 0.000000e+00 : f32
      %53 = vector.broadcast %cst_21 : f32 to vector<8x128xf32>
      %c0_22 = arith.constant 0 : index
      %c0_23 = arith.constant 0 : index
      %54 = vector.load %arg3[%c0_22, %c0_23] : memref<8x128xf32, #tpu.memory_space<vmem>>, vector<8x128xf32>
      tpu.vector_store %arg3[%c0_22, %c0_23], %53 {strides = array<i32>} : memref<8x128xf32, #tpu.memory_space<vmem>>, vector<8x128xf32>,
    } else {
    }
    %c0_16 = arith.constant 0 : index
    %c0_17 = arith.constant 0 : index
    %45 = vector.load %arg3[%c0_16, %c0_17] : memref<8x128xf32, #tpu.memory_space<vmem>>, vector<8x128xf32>
    %46 = vector.shape_cast %41 : vector<64x1xf32> to vector<1x64x1xf32>
    %cst_18 = arith.constant dense<0.000000e+00> : vector<1xf32>
    %47 = vector.multi_reduction <add>, %46, %cst_18 [1, 2] : vector<1x64x1xf32> to vector<1xf32>
    %48 = vector.shape_cast %47 : vector<1xf32> to vector<1x1x1xf32>
    %49 = vector.extract %48[0, 0, 0] : f32 from vector<1x1x1xf32>
    %50 = vector.broadcast %49 : f32 to vector<8x128xf32>
    %51 = arith.addf %45, %50 : vector<8x128xf32>
    %c0_19 = arith.constant 0 : index
    %c0_20 = arith.constant 0 : index
    %52 = vector.load %arg3[%c0_19, %c0_20] : memref<8x128xf32, #tpu.memory_space<vmem>>, vector<8x128xf32>
    tpu.vector_store %arg3[%c0_19, %c0_20], %51 {strides = array<i32>} : memref<8x128xf32, #tpu.memory_space<vmem>>, vector<8x128xf32>,
    return
  }
  func.func @transform_0(%arg0: i32) -> (i32, i32) {
    %c0_i32 = arith.constant 0 : i32
    %c0_i32_0 = arith.constant 0 : i32
    return %arg0, %c0_i32 : i32, i32
  }
  func.func @transform_1(%arg0: i32) -> (i32, i32) {
    %c0_i32 = arith.constant 0 : i32
    %c0_i32_0 = arith.constant 0 : i32
    return %arg0, %c0_i32 : i32, i32
  }
  func.func @transform_2(%arg0: i32) -> (i32, i32) {
    %c0_i32 = arith.constant 0 : i32
    %c0_i32_0 = arith.constant 0 : i32
    %c0_i32_1 = arith.constant 0 : i32
    return %c0_i32, %c0_i32_0 : i32, i32
  }
}

</mosaic_0001>

<bundles_post_ra>
// kernel: tpu_custom_call.1
= control target key start
LH: loop header
LB: loop body
LE: loop exit
PB: predicated region body
PF: predicated region fallthrough
CT: control target
= control target key end

     0   :  { %7 = vsyncpa [#allocation3], 0  ;;  %s663_s9 = smov 0   ;;  %s811_s0 = inlined_call_operand.vmem [shape: f32[200,32], index: 0, kind: input, shape index: {}]   ;;  %s812_s1 = inlined_call_operand.vmem [shape: f32[200,1], index: 1, kind: input, shape index: {}]   ;;  %s813_s2 = inlined_call_operand.hbm [shape: f32[8,128], index: 2, kind: output, shape index: {}]  }
   0x1 LB: > { %s669_s10 = sadd.s32 4294967295, %s644_s9   ;;  %p549_p0 = scmp.ge.s32.totalorder %s644_s9, 1  ;;  %s644_s9 = sphi %s663_s9, %s13_s9  }
   0x2   : > { %p136_p1 = scmp.lt.s32.totalorder %s644_s9, 5 }
   0x4   : > { %p137_p2 = pnand %p549_p0, %p136_p1 }
   0x5   : > { %s550_s11 = sshll.u32 (!%p137_p2), %s669_s10, 3  ;;  %s554_s19 = sshll.u32 (!%p137_p2), %s669_s10, 6 }
   0x6   : > { %140 = sbr.rel (%p137_p2) target bundleno = 456 (0x1c8), region = 28  ;;  %p171_p3 = scmp.lt.s32.totalorder (!%p137_p2), %s550_s11, 24 }
   0x7   : > { %p555_p4 = scmp.ne.s32.totalorder (!%p137_p2), %s669_s10, 0 }
   0xb   : > { %s815_s11 = smov (!%p171_p3, %s550_s11), 24  ;;  %vm322_vm0 = vcmask 261120  }
   0xc   : > { %s551_s12 = sshll.u32 %s815_s11, 3 }
   0xd   : > { %s174_s15 = scalar_lea.vmem %s811_s0, %s551_s12  ;;  %s747_s18 = scalar_lea.vmem %s812_s1, %s551_s12 }
   0xe   : > { %v682_v0 = vld [vmem:[%s174_s15 + $0x8] sm:$0xff]  ;;  %v684_v1 = vld [vmem:[%s174_s15] sm:$0xff]  ;;  %v686_v2 = vld [vmem:[%s174_s15 + $0x18] sm:$0xff] }
   0xf   : > { %v219_v3 = vand.u32 2147483647, %v682_v0  ;;  %v218_v4 = vand.u32 2147483647, %v684_v1  ;;  %v221_v5 = vand.u32 2147483647, %v686_v2 }
  0x10   : > { %v691_v6 = vld [vmem:[%s174_s15 + $0x10] sm:$0xff]  ;;  %v693_v7 = vld [vmem:[%s174_s15 + $0x28] sm:$0xff]  ;;  %v696_v11 = vld [vmem:[%s174_s15 + $0x20] sm:$0xff]  ;;  %v211_v48 = vmin.f32 %v682_v0, 0.0  ;;  %v210_v50 = vmin.f32 %v684_v1, 0.0  ;;  %v213_v53 = vmin.f32 %v686_v2, 0.0 }
  0x11   : > { %v227_v8 = vsub.f32 0.0, %v219_v3  ;;  %v226_v9 = vsub.f32 0.0, %v218_v4  ;;  %v220_v10 = vand.u32 2147483647, %v691_v6  ;;  %v229_v12 = vsub.f32 0.0, %v221_v5  ;;  %v699_v14 = vld [vmem:[%s174_s15 + $0x38] sm:$0xff] }
  0x12   : > { %v223_v13 = vand.u32 2147483647, %v693_v7  ;;  %v701_v15 = vld [vmem:[%s174_s15 + $0x30] sm:$0xff]  ;;  %v222_v21 = vand.u32 2147483647, %v696_v11  ;;  %v212_v56 = vmin.f32 %v691_v6, 0.0 }
  0x13   : > { %v236_v16 = vmul.f32 1.442695, %v227_v8  ;;  %v234_v17 = vmul.f32 1.442695, %v226_v9  ;;  %v228_v18 = vsub.f32 0.0, %v220_v10  ;;  %v215_v60 = vmin.f32 %v693_v7, 0.0 }
  0x14   : > { %v240_v19 = vmul.f32 1.442695, %v229_v12  ;;  %v231_v20 = vsub.f32 0.0, %v223_v13  ;;  %v225_v23 = vand.u32 2147483647, %v699_v14  ;;  %v230_v26 = vsub.f32 0.0, %v222_v21 }
  0x15   : > { %578 = vpow2.f32 %v236_v16  ;;  %v238_v22 = vmul.f32 1.442695, %v228_v18  ;;  %v224_v24 = vand.u32 2147483647, %v701_v15  ;;  %v214_v3 = vmin.f32 %v696_v11, 0.0 }
  0x16   : > { %580 = vpow2.f32 %v234_v17  ;;  %v244_v25 = vmul.f32 1.442695, %v231_v20  ;;  %v233_v27 = vsub.f32 0.0, %v225_v23  ;;  %v242_v29 = vmul.f32 1.442695, %v230_v26 }
  0x17   : > { %582 = vpow2.f32 %v240_v19  ;;  %v232_v28 = vsub.f32 0.0, %v224_v24 }
  0x18   : > { %584 = vpow2.f32 %v238_v22  ;;  %v248_v30 = vmul.f32 1.442695, %v233_v27 }
  0x19   : > { %586 = vpow2.f32 %v244_v25  ;;  %v246_v31 = vmul.f32 1.442695, %v232_v28 }
  0x1a   : > { %588 = vpow2.f32 %v242_v29 }
  0x1b   : > { %590 = vpow2.f32 %v248_v30 }
  0x1c   : > { %592 = vpow2.f32 %v246_v31 }
  0x22   : > { %v579_v32 = vpop.eup %578 }
  0x23   : > { %v581_v33 = vpop.eup %580  ;;  %v251_v34 = vadd.f32 1.0, %v579_v32 }
  0x24   : > { %v583_v35 = vpop.eup %582  ;;  %v250_v36 = vadd.f32 1.0, %v581_v33  ;;  %v217_v33 = vmin.f32 %v699_v14, 0.0 }
  0x25   : > { %v585_v37 = vpop.eup %584  ;;  %594 = vlog2.f32 %v251_v34  ;;  %v253_v38 = vadd.f32 1.0, %v583_v35  ;;  %v216_v35 = vmin.f32 %v701_v15, 0.0 }
  0x26   : > { %v587_v39 = vpop.eup %586  ;;  %596 = vlog2.f32 %v250_v36  ;;  %v252_v40 = vadd.f32 1.0, %v585_v37 }
  0x27   : > { %v589_v41 = vpop.eup %588  ;;  %598 = vlog2.f32 %v253_v38  ;;  %v255_v42 = vadd.f32 1.0, %v587_v39 }
  0x28   : > { %v591_v43 = vpop.eup %590  ;;  %600 = vlog2.f32 %v252_v40  ;;  %v254_v44 = vadd.f32 1.0, %v589_v41 }
  0x29   : > { %v593_v45 = vpop.eup %592  ;;  %602 = vlog2.f32 %v255_v42  ;;  %v257_v46 = vadd.f32 1.0, %v591_v43 }
  0x2a   : > { %604 = vlog2.f32 %v254_v44  ;;  %v256_v47 = vadd.f32 1.0, %v593_v45 }
  0x2b   : > { %606 = vlog2.f32 %v257_v46 }
  0x2c   : > { %608 = vlog2.f32 %v256_v47 }
  0x32   : > { %v595_v49 = vpop.eup %594 }
  0x33   : > { %v597_v51 = vpop.eup %596  ;;  %v261_v52 = vmul.f32 0.6931472, %v595_v49 }
  0x34   : > { %v599_v54 = vpop.eup %598  ;;  %v259_v55 = vmul.f32 0.6931472, %v597_v51 }
  0x35   : > { %v601_v57 = vpop.eup %600  ;;  %v275_v58 = vsub.f32 %v211_v48, %v261_v52  ;;  %v265_v59 = vmul.f32 0.6931472, %v599_v54 }
  0x36   : > { %v603_v61 = vpop.eup %602  ;;  %v274_v62 = vsub.f32 %v210_v50, %v259_v55  ;;  %v263_v63 = vmul.f32 0.6931472, %v601_v57 }
  0x37   : > { %v605_v4 = vpop.eup %604  ;;  %v283_v5 = vmax.f32 %v275_v58, -27.631021  ;;  %v277_v8 = vsub.f32 %v213_v53, %v265_v59  ;;  %v269_v9 = vmul.f32 0.6931472, %v603_v61  ;;  %v291_v31 = vsub.f32 %v275_v58, %v682_v0 }
  0x38   : > { %v282_v10 = vmax.f32 %v274_v62, -27.631021  ;;  %v276_v12 = vsub.f32 %v212_v56, %v263_v63  ;;  %v267_v13 = vmul.f32 0.6931472, %v605_v4  ;;  %v290_v16 = vsub.f32 %v274_v62, %v684_v1  ;;  %v607_v28 = vpop.eup %606 }
  0x39   : > { %v326_v17 = vsel %vm322_vm0, %v283_v5, -inf  ;;  %v285_v18 = vmax.f32 %v277_v8, -27.631021  ;;  %v279_v19 = vsub.f32 %v215_v60, %v269_v9  ;;  %v293_v27 = vsub.f32 %v277_v8, %v686_v2  ;;  %v609_v32 = vpop.eup %608 }
  0x3a   : > { %327 = vmax.xlane.f32.xlu1 %v326_v17  ;;  %v323_v20 = vsel %vm322_vm0, %v282_v10, -inf  ;;  %v284_v21 = vmax.f32 %v276_v12, -27.631021  ;;  %v278_v22 = vsub.f32 %v214_v3, %v267_v13  ;;  %v292_v23 = vsub.f32 %v276_v12, %v691_v6  ;;  %v203_v13 = vld [vmem:[%s747_s18 + $0x8] sm:$0xff] }
  0x3b   : > { %324 = vmax.xlane.f32.xlu0 %v323_v20  ;;  %v332_v24 = vsel %vm322_vm0, %v285_v18, -inf  ;;  %v287_v25 = vmax.f32 %v279_v19, -27.631021  ;;  %v298_v26 = vmax.f32 %v290_v16, -27.631021  ;;  %v295_v6 = vsub.f32 %v279_v19, %v693_v7  ;;  %v204_v16 = vld [vmem:[%s747_s18 + $0x10] sm:$0xff] }
  0x3c   : > { %v329_v1 = vsel %vm322_vm0, %v284_v21, -inf  ;;  %v286_v29 = vmax.f32 %v278_v22, -27.631021  ;;  %v300_v30 = vmax.f32 %v292_v23, -27.631021  ;;  %v294_v34 = vsub.f32 %v278_v22, %v696_v11  ;;  %v202_v18 = vld [vmem:[%s747_s18] sm:$0xff] }
  0x3d   : > { %v338_v2 = vsel %vm322_vm0, %v287_v25, -inf  ;;  %v301_v37 = vmax.f32 %v293_v27, -27.631021  ;;  %v273_v38 = vmul.f32 0.6931472, %v607_v28  ;;  %v306_v40 = vmin.f32 %v298_v26, 0.0 }
  0x3e   : > { %333 = vmax.xlane.f32.xlu1 %v332_v24  ;;  %v308_v36 = vmin.f32 %v300_v30, 0.0  ;;  %v335_v39 = vsel %vm322_vm0, %v286_v29, -inf  ;;  %v299_v0 = vmax.f32 %v291_v31, -27.631021  ;;  %v271_v41 = vmul.f32 0.6931472, %v609_v32 }
  0x3f   : > { %330 = vmax.xlane.f32.xlu0 %v329_v1  ;;  %v281_v42 = vsub.f32 %v217_v33, %v273_v38  ;;  %v309_v11 = vmin.f32 %v301_v37, 0.0  ;;  %v303_v44 = vmax.f32 %v295_v6, -27.631021  ;;  %v371_v46 = vsel %vm322_vm0, %v306_v40, 0.0  ;;  %v205_v21 = vld [vmem:[%s747_s18 + $0x18] sm:$0xff]  ;;  %v760_v25 = vld [vmem:[%s747_s18 + $0x28] sm:$0xff] }
  0x40   : > { %v280_v43 = vsub.f32 %v216_v35, %v271_v41  ;;  %v377_v7 = vsel %vm322_vm0, %v308_v36, 0.0  ;;  %v307_v47 = vmin.f32 %v299_v0, 0.0  ;;  %v302_v48 = vmax.f32 %v294_v34, -27.631021  ;;  %v766_v29 = vld [vmem:[%s747_s18 + $0x20] sm:$0xff] }
  0x41   : > { %v297_v45 = vsub.f32 %v281_v42, %v699_v14  ;;  %v380_v50 = vsel %vm322_vm0, %v309_v11, 0.0  ;;  %v311_v51 = vmin.f32 %v303_v44, 0.0  ;;  %v289_v59 = vmax.f32 %v281_v42, -27.631021  ;;  %v209_v11 = vld [vmem:[%s747_s18 + $0x38] sm:$0xff] }
  0x42   : > { %339 = vmax.xlane.f32.xlu1 %v338_v2  ;;  %v296_v49 = vsub.f32 %v280_v43, %v701_v15  ;;  %v374_v53 = vsel %vm322_vm0, %v307_v47, 0.0  ;;  %v310_v54 = vmin.f32 %v302_v48, 0.0  ;;  %v288_v61 = vmax.f32 %v280_v43, -27.631021  ;;  %v208_v48 = vld [vmem:[%s747_s18 + $0x30] sm:$0xff] }
  0x43   : > { %336 = vmax.xlane.f32.xlu0 %v335_v39  ;;  %v305_v52 = vmax.f32 %v297_v45, -27.631021  ;;  %v386_v14 = vsel %vm322_vm0, %v311_v51, 0.0  ;;  %v344_v62 = vsel %vm322_vm0, %v289_v59, -inf  ;;  %v420_v3 = vlaneseq }
  0x44   : > { %v304_v55 = vmax.f32 %v296_v49, -27.631021  ;;  %v383_v57 = vsel %vm322_vm0, %v310_v54, 0.0  ;;  %v341_v63 = vsel %vm322_vm0, %v288_v61, -inf  ;;  %v753_v17 = vstv %s554_s19 }
  0x45   : > { %v313_v56 = vmin.f32 %v305_v52, 0.0  ;;  %v740_v8 = vshrl.u32 %v420_v3, 7  ;;  %v357_v19 = vsub.f32 1.0, %v204_v16  ;;  %v355_v20 = vsub.f32 1.0, %v202_v18 }
  0x46   : > { %378 = vadd.xlane.f32.xlu1 %v377_v7  ;;  %v312_v58 = vmin.f32 %v304_v55, 0.0  ;;  %v315_v23 = vsub.f32 0.0, %v203_v13  ;;  %v358_v24 = vsub.f32 1.0, %v205_v21  ;;  %v356_v28 = vsub.f32 1.0, %v203_v13 }
  0x47   : > { %372 = vadd.xlane.f32.xlu0 %v371_v46  ;;  %v392_v15 = vsel %vm322_vm0, %v313_v56, 0.0  ;;  %v423_v12 = vadd.s32 16, %v740_v8  ;;  %v314_v1 = vsub.f32 0.0, %v202_v18  ;;  %v430_v30 = vadd.s32 %v753_v17, %v740_v8 }
  0x48   : > { %v389_v60 = vsel %vm322_vm0, %v312_v58, 0.0  ;;  %v424_v31 = vadd.s32 24, %v740_v8  ;;  %v316_v32 = vsub.f32 0.0, %v204_v16  ;;  %v360_v33 = vsub.f32 1.0, %v760_v25 }
  0x49   : > { %v432_v27 = vadd.s32 %v753_v17, %v423_v12  ;;  %v365_v6 = vsub.f32 0.0, %v357_v19  ;;  %v422_v34 = vadd.s32 8, %v740_v8  ;;  %v317_v35 = vsub.f32 0.0, %v205_v21 }
  0x4a   : > { %381 = vadd.xlane.f32.xlu1 %v380_v50  ;;  %v319_v2 = vsub.f32 0.0, %v760_v25  ;;  %v359_v36 = vsub.f32 1.0, %v766_v29  ;;  %v363_v38 = vsub.f32 0.0, %v355_v20  ;;  %v318_v39 = vsub.f32 0.0, %v766_v29 }
  0x4b   : > { %375 = vadd.xlane.f32.xlu0 %v374_v53  ;;  %vm440_vm1 = vcmp.lt.s32.totalorder %v432_v27, 200  ;;  %v366_v41 = vsub.f32 0.0, %v358_v24  ;;  %vm438_vm2 = vcmp.lt.s32.totalorder %v430_v30, 200  ;;  %v433_v43 = vadd.s32 %v753_v17, %v424_v31 }
  0x4c   : > { %v364_v7 = vsub.f32 0.0, %v356_v28  ;;  %v431_v46 = vadd.s32 %v753_v17, %v422_v34  ;;  %v368_v47 = vsub.f32 0.0, %v360_v33  ;;  %v426_v52 = vadd.s32 40, %v740_v8 }
  0x4d   : > { %v367_v53 = vsub.f32 0.0, %v359_v36  ;;  %v425_v56 = vadd.s32 32, %v740_v8  ;;  %vm441_vm3 = vcmp.lt.s32.totalorder %v433_v43, 200  ;;  %v361_v59 = vsub.f32 1.0, %v208_v48 }
  0x4e   : > { %387 = vadd.xlane.f32.xlu1 %v386_v14  ;;  %vm439_vm4 = vcmp.lt.s32.totalorder %v431_v46, 200  ;;  %v428_v25 = vadd.s32 56, %v740_v8  ;;  %v427_v28 = vadd.s32 48, %v740_v8  ;;  %v321_v34 = vsub.f32 0.0, %v209_v11 }
  0x4f   : > { %384 = vadd.xlane.f32.xlu0 %v383_v57  ;;  %v362_v57 = vsub.f32 1.0, %v209_v11  ;;  %v434_v18 = vadd.s32 %v753_v17, %v425_v56  ;;  %v369_v24 = vsub.f32 0.0, %v361_v59 }
  0x50   : > { %v436_v8 = vadd.s32 %v753_v17, %v427_v28 }
  0x51   : > { %v370_v20 = vsub.f32 0.0, %v362_v57  ;;  %vm442_vm6 = vcmp.lt.s32.totalorder %v434_v18, 200 }
  0x52   : > { %393 = vadd.xlane.f32.xlu1 %v392_v15  ;;  %vm444_vm8 = vcmp.lt.s32.totalorder %v436_v8, 200 }
  0x53   : > { %390 = vadd.xlane.f32.xlu0 %v389_v60 }
  0x56   : > { %345 = vmax.xlane.f32.xlu1 %v344_v62 }
  0x57   : > { %342 = vmax.xlane.f32.xlu0 %v341_v63 }
  0xc3   : > { %v738_v4 = vpop.xlane.xlu1 %327 }
  0xc4   : > { %v325_v5 = vpop.xlane.xlu0 %324  ;;  %v348_v63 = vmul.f32 %v738_v4, %v315_v23 }
  0xc5   : > { %v347_v49 = vmul.f32 %v325_v5, %v314_v1 }
  0xc7   : > { %v334_v9 = vpop.xlane.xlu1 %333 }
  0xc8   : > { %v331_v10 = vpop.xlane.xlu0 %330  ;;  %v350_v60 = vmul.f32 %v334_v9, %v317_v35 }
  0xc9   : > { %v349_v44 = vmul.f32 %v331_v10, %v316_v32  ;;  %v435_v10 = vadd.s32 %v753_v17, %v426_v52 }
  0xcb   : > { %v757_v22 = vpop.xlane.xlu1 %339  ;;  %vm443_vm5 = vcmp.lt.s32.totalorder %v435_v10, 200 }
  0xcc   : > { %v762_v26 = vpop.xlane.xlu0 %336  ;;  %v352_v27 = vmul.f32 %v757_v22, %v319_v2  ;;  %v437_v22 = vadd.s32 %v753_v17, %v428_v25  ;;  %v320_v2 = vsub.f32 0.0, %v208_v48 }
  0xcd   : > { %v351_v1 = vmul.f32 %v762_v26, %v318_v39 }
  0xce   : > { %vm445_vm7 = vcmp.lt.s32.totalorder %v437_v22, 200 }
  0xcf   : > { %v379_v37 = vpop.xlane.xlu1 %378 }
  0xd0   : > { %v397_v40 = vmul.f32 0.03125, %v379_v37  ;;  %v373_v0 = vpop.xlane.xlu0 %372 }
  0xd1   : > { %v395_v42 = vmul.f32 0.03125, %v373_v0 }
  0xd2   : > { %v405_v45 = vmul.f32 %v397_v40, %v365_v6 }
  0xd3   : > { %v403_v50 = vmul.f32 %v395_v42, %v363_v38  ;;  %v382_v51 = vpop.xlane.xlu1 %381 }
  0xd4   : > { %v413_v54 = vadd.f32 %v405_v45, %v349_v44  ;;  %v398_v55 = vmul.f32 0.03125, %v382_v51  ;;  %v376_v14 = vpop.xlane.xlu0 %375 }
  0xd5   : > { %v411_v58 = vadd.f32 %v403_v50, %v347_v49  ;;  %v396_v15 = vmul.f32 0.03125, %v376_v14 }
  0xd6   : > { %v448_v61 = vsel %vm440_vm1, %v413_v54, 0.0  ;;  %v406_v62 = vmul.f32 %v398_v55, %v366_v41 }
  0xd7   : > { %v446_v3 = vsel %vm438_vm2, %v411_v58, 0.0  ;;  %v404_v5 = vmul.f32 %v396_v15, %v364_v7  ;;  %v388_v12 = vpop.xlane.xlu1 %387 }
  0xd8   : > { %v414_v13 = vadd.f32 %v406_v62, %v350_v60  ;;  %v400_v16 = vmul.f32 0.03125, %v388_v12  ;;  %v385_v19 = vpop.xlane.xlu0 %384 }
  0xd9   : > { %v412_v21 = vadd.f32 %v404_v5, %v348_v63  ;;  %v399_v9 = vmul.f32 0.03125, %v385_v19 }
  0xda   : > { %v449_v4 = vsel %vm441_vm3, %v414_v13, 0.0  ;;  %v408_v23 = vmul.f32 %v400_v16, %v368_v47 }
  0xdb   : > { %v447_v29 = vsel %vm439_vm4, %v412_v21, 0.0  ;;  %v407_v30 = vmul.f32 %v399_v9, %v367_v53  ;;  %v394_v31 = vpop.xlane.xlu1 %393 }
  0xdc   : > { %v416_v32 = vadd.f32 %v408_v23, %v352_v27  ;;  %v402_v33 = vmul.f32 0.03125, %v394_v31  ;;  %v391_v6 = vpop.xlane.xlu0 %390 }
  0xdd   : > { %v415_v35 = vadd.f32 %v407_v30, %v351_v1  ;;  %v401_v36 = vmul.f32 0.03125, %v391_v6 }
  0xde   : > { %v451_v37 = vsel %vm443_vm5, %v416_v32, 0.0  ;;  %v410_v39 = vmul.f32 %v402_v33, %v370_v20 }
  0xdf   : > { %v450_v38 = vsel %vm442_vm6, %v415_v35, 0.0  ;;  %v346_v26 = vpop.xlane.xlu1 %345  ;;  %v409_v41 = vmul.f32 %v401_v36, %v369_v24 }
  0xe0   : > { %v354_v40 = vmul.f32 %v346_v26, %v321_v34  ;;  %v343_v0 = vpop.xlane.xlu0 %342 }
  0xe1   : > { %v353_v42 = vmul.f32 %v343_v0, %v320_v2  ;;  %457 = sbr.rel (%p555_p4) target bundleno = 232 (0xe8), region = 32 }
  0xe2   : > { %v418_v43 = vadd.f32 %v410_v39, %v354_v40 }
  0xe3   : > { %v417_v7 = vadd.f32 %v409_v41, %v353_v42 }
  0xe4   : > { %v453_v11 = vsel %vm445_vm7, %v418_v43, 0.0 }
  0xe5   : > { %v452_v44 = vsel %vm444_vm8, %v417_v7, 0.0 }
  0xe6   : > { %v646_v45 = vmov 0.0  }
  0xe7   : > { %458 = vst [vmem:[#allocation2] sm:$0xff] %v646_v45 }
  0xe8 PF: > { %vm460_vm9 = vcmask 7168   ;;  %s647_s20 = smov [#allocation2]   ;;  %p566_p5 = scmp.eq.s32.totalorder %s669_s10, 3 }
  0xe9   : > { %v461_v17 = vsel %vm460_vm9, %v446_v3, 0.0  ;;  %v462_v46 = vsel %vm460_vm9, %v447_v29, 0.0  ;;  %v464_v47 = vsel %vm460_vm9, %v448_v61, 0.0  ;;  %v466_v49 = vsel %vm460_vm9, %v449_v4, 0.0  ;;  %s495_s21 = sshll.u32 %s647_s20, 4  ;;  %s496_s21 = int_to_ptr.vmem [resolvable:$true] %s495_s21 }
  0xea   : > { %v463_v48 = vadd.f32 %v462_v46, %v461_v17  ;;  %v468_v51 = vsel %vm460_vm9, %v450_v38, 0.0  ;;  %v470_v53 = vsel %vm460_vm9, %v451_v37, 0.0  ;;  %v472_v55 = vsel %vm460_vm9, %v452_v44, 0.0  ;;  %s610_s23 = scalar_lea.vmem %s496_s21, 128  ;;  %p617_p9 = scmp.lt.s32.totalorder %s496_s21, %s496_s21 }
  0xeb   : > { %v474_v56 = vsel %vm460_vm9, %v453_v11, 0.0  ;;  %p611_p6 = scmp.ne.s32.totalorder %s496_s21, %s610_s23  ;;  %p618_p10 = scmp.lt.s32.totalorder %s610_s23, %s610_s23 }
  0xec   : > { %v465_v50 = vadd.f32 %v464_v47, %v463_v48 }
  0xed   : > { %p612_p7 = pnand %p611_p6, %p566_p5  ;;  %p619_p11 = por %p618_p10, %p617_p9 }
  0xee   : > { %v467_v52 = vadd.f32 %v466_v49, %v465_v50  ;;  %v459_v5 = vld [vmem:[#allocation2] sm:$0xff] }
  0xef   : > { %p613_p8 = pneg %p612_p7 }
  0xf0   : > { %v469_v54 = vadd.f32 %v468_v51, %v467_v52 }
  0xf1   : > { %p620_p12 = pnand %p619_p11, %p613_p8 }
  0xf2   : > { %v471_v14 = vadd.f32 %v470_v53, %v469_v54 }
  0xf4   : > { %v473_v57 = vadd.f32 %v472_v55, %v471_v14 }
  0xf6   : > { %v475_v58 = vadd.f32 %v474_v56, %v473_v57 }
  0xf8   : > { %476 = vadd.xlane.f32.xlu0 %v475_v58 }
 0x181   : > { %v477_v15 = vpop.xlane.xlu0 %476 }
 0x182   : > { %v478_v59 = vrot.slane %v477_v15, 4 }
 0x184   : > { %v479_v60 = vadd.f32 %v478_v59, %v477_v15 }
 0x186   : > { %v480_v62 = vrot.slane %v479_v60, 2 }
 0x188   : > { %v481_v61 = vadd.f32 %v480_v62, %v479_v60 }
 0x18a   : > { %v482_v63 = vrot.slane %v481_v61, 1 }
 0x18c   : > { %v483_v3 = vadd.f32 %v482_v63, %v481_v61 }
 0x18e   : > { %560 = vpush %v483_v3 }
 0x1bf   : > { %s561_s22 = spop %560 }
 0x1c0   : > { %v485_v10 = vstv %s561_s22 }
 0x1c1   : > { %v486_v12 = vadd.f32 %v485_v10, %v459_v5 }
 0x1c3   : > { %487 = vst [vmem:[#allocation2] sm:$0xff] %v486_v12 }
 0x1c4   : > { %623 = shalt.err (!%p620_p12)
}
 0x1c5   : > { %563 = dma.vmem_to_hbm [thread:$0]  (%p566_p5), %s496_s21, 128, %s813_s2, [#allocation3]  }
 0x1c6   : > { %639 = dma.done.wait (%p566_p5), [#allocation3], 128  }
 0x1c7   : > { %641 = vsyncadd (%p566_p5), [#allocation3], 4294967168 }
 0x1c8 PF: > { %s13_s9 = sadd.s32 1, %s644_s9  }
 0x1c9   : > { %p10_p13 = scmp.ge.s32.totalorder %s13_s9, 6  }
 0x1cb   :  { %12 = sbr.rel (!%p10_p13) target bundleno = 1 (0x1), region = 62 }
 0x1d0   :  { %508 = vsyncpa [#allocation3], 1 }
 0x1d1   :  { %510 = vsyncpa [#allocation3 + $0x1], 1 }

</bundles_post_ra>
